<compile_context>
chip_gen: v5e
topology: v5e:2x2
jax: 0.10.0
libtpu: 0.0.40
codegen_flags: <defaults>
</compile_context>

<pallas_src>
import functools

import jax
import jax.numpy as jnp
from jax.experimental import pallas as pl
from jax.experimental.pallas import tpu as pltpu


# ---------------------------------------------------------------------------
# Pass 1: fused QKV projection.  One tile of x -> Q, K, V, computed once.
# ---------------------------------------------------------------------------
def _qkv_proj_kernel(x_ref, w_ref, q_ref, k_ref, v_ref, *, compute_dtype):
    E = q_ref.shape[-1]
    x = x_ref[0]                                                   # (tp, E) bf16
    q_ref[0] = jnp.dot(x, w_ref[:, :E],
                       preferred_element_type=jnp.float32).astype(compute_dtype)
    k_ref[0] = jnp.dot(x, w_ref[:, E:2 * E],
                       preferred_element_type=jnp.float32).astype(compute_dtype)
    v_ref[0] = jnp.dot(x, w_ref[:, 2 * E:],
                       preferred_element_type=jnp.float32).astype(compute_dtype)


# ---------------------------------------------------------------------------
# Pass 2: flash-style causal attention + fused output projection.
# ---------------------------------------------------------------------------
def _flash_attn_kernel(q_ref, k_ref, v_ref, wo_ref, bo_ref, o_ref,
                       acc_scr, m_scr, l_scr,
                       *, heads, tq, tk, compute_dtype):
    qi = pl.program_id(1)
    ki = pl.program_id(2)
    E = wo_ref.shape[0]
    hd = E // heads
    scale = 1.0 / (hd ** 0.5)

    q_start = qi * tq
    k_start = ki * tk

    # ---- first KV step for this (batch, query tile): reset running stats.
    @pl.when(ki == 0)
    def _init():
        m_scr[...] = jnp.full_like(m_scr, -jnp.inf)
        l_scr[...] = jnp.zeros_like(l_scr)
        acc_scr[...] = jnp.zeros_like(acc_scr)

    # Block contributes iff it contains at least one (row, col) with col <= row.
    needed = k_start <= q_start + (tq - 1)
    # The causal mask is only required on diagonal-straddling blocks.
    straddles = k_start + (tk - 1) > q_start

    def _step(masked):
        if masked:
            row = q_start + jax.lax.broadcasted_iota(jnp.int32, (tq, tk), 0)
            col = k_start + jax.lax.broadcasted_iota(jnp.int32, (tq, tk), 1)
            causal = col <= row
        # heads is small here; static unroll keeps every slice lane-static.
        # TODO(synk): switch to lax.fori_loop once heads >= ~8 to bound vregs.
        for h in range(heads):
            sl = slice(h * hd, (h + 1) * hd)
            qh = q_ref[0, :, sl]                                   # (tq, hd) bf16
            kh = k_ref[0, :, sl]                                   # (tk, hd) bf16
            # q @ k^T without materializing a transpose.
            s = jax.lax.dot_general(
                qh, kh, dimension_numbers=(((1,), (1,)), ((), ())),
                preferred_element_type=jnp.float32) * scale        # (tq, tk) f32
            if masked:
                s = jnp.where(causal, s, -jnp.inf)

            m_prev = m_scr[h]                                      # (tq, 128) repl.
            l_prev = l_scr[h]                                      # (tq, 128) repl.
            m_new = jnp.maximum(m_prev, jnp.max(s, axis=-1, keepdims=True))
            alpha = jnp.exp(m_prev - m_new)                        # (tq, 128) repl.
            p = jnp.exp(s - m_new[:, :1])                          # (tq, tk) f32
            l_scr[h] = alpha * l_prev + jnp.sum(p, axis=-1, keepdims=True)
            m_scr[h] = m_new
            acc_scr[:, sl] = alpha[:, :1] * acc_scr[:, sl] + jnp.dot(
                p.astype(compute_dtype), v_ref[0, :, sl],
                preferred_element_type=jnp.float32)                # (tq, hd) f32

    @pl.when(jnp.logical_and(needed, straddles))
    def _compute_masked():
        _step(True)

    @pl.when(jnp.logical_and(needed, jnp.logical_not(straddles)))
    def _compute_unmasked():
        _step(False)

    # ---- last KV step: normalize, one fused output projection, add bias.
    @pl.when(ki == pl.num_programs(2) - 1)
    def _finalize():
        inv_parts = []
        for h in range(heads):
            inv_l = pl.reciprocal(l_scr[h][:, :1], approx=True)    # (tq, 1)
            inv_parts.append(jnp.broadcast_to(inv_l, (tq, hd)))
        inv_full = jnp.concatenate(inv_parts, axis=-1)             # (tq, E)
        o_n = (acc_scr[...] * inv_full).astype(compute_dtype)      # (tq, E) bf16
        out = jnp.dot(o_n, wo_ref[...], preferred_element_type=jnp.float32)
        o_ref[0] = (out + bo_ref[...]).astype(o_ref.dtype)


def _pick_tile(n, pref):
    t = max(1, min(pref, n))
    while n % t != 0:
        t //= 2
    return t


def self_attention_pallas(x, wq_t, wk_t, wv_t, wo_t, bo, *, heads,
                          q_tile=256, kv_tile=256, proj_tile=256,
                          compute_dtype=jnp.bfloat16,
                          vmem_limit_bytes=64 * 1024 * 1024):
    """x: (B,T,E); w*_t: (E_in,E_out) = torch W.T; bo: (1,E)."""
    B, T, E = x.shape
    assert E % heads == 0
    hd = E // heads
    tq = _pick_tile(T, q_tile)
    tk = _pick_tile(T, kv_tile)
    tp = _pick_tile(T, proj_tile)

    # Single fused [Wq | Wk | Wv]^T weight buffer; bf16 operands for the MXU.
    w_qkv = jnp.concatenate([wq_t, wk_t, wv_t], axis=1).astype(compute_dtype)
    w_o = wo_t.astype(compute_dtype)
    x_c = x.astype(compute_dtype)
    bo_f32 = bo.astype(jnp.float32)

    # ----------------- Pass 1: QKV projection (computed once) -----------------
    proj_kernel = functools.partial(_qkv_proj_kernel, compute_dtype=compute_dtype)
    q, k, v = pl.pallas_call(
        proj_kernel,
        out_shape=(jax.ShapeDtypeStruct((B, T, E), compute_dtype),) * 3,
        grid_spec=pltpu.PrefetchScalarGridSpec(
            num_scalar_prefetch=0,
            grid=(B, T // tp),
            in_specs=[
                pl.BlockSpec((1, tp, E), lambda b, ti: (b, ti, 0)),
                pl.BlockSpec((E, 3 * E), lambda b, ti: (0, 0)),
            ],
            out_specs=[pl.BlockSpec((1, tp, E), lambda b, ti: (b, ti, 0))] * 3),
        compiler_params=pltpu.CompilerParams(
            dimension_semantics=("parallel", "parallel"),
            vmem_limit_bytes=vmem_limit_bytes),
    )(x_c, w_qkv)

    # ----------------- Pass 2: flash attention + output projection ------------
    attn_kernel = functools.partial(_flash_attn_kernel, heads=heads, tq=tq, tk=tk,
                                    compute_dtype=compute_dtype)
    n_q = T // tq
    n_k = T // tk

    def kv_index(b, qi, ki):
        # Clamp to the last causally-needed block so skipped steps issue no DMA.
        last_needed = (qi * tq + (tq - 1)) // tk
        return (b, jnp.minimum(ki, last_needed), 0)

    out = pl.pallas_call(
        attn_kernel,
        out_shape=jax.ShapeDtypeStruct((B, T, E), x.dtype),
        grid_spec=pltpu.PrefetchScalarGridSpec(
            num_scalar_prefetch=0,
            grid=(B, n_q, n_k),
            in_specs=[
                # Q tile (constant across the KV axis).
                pl.BlockSpec((1, tq, E), lambda b, qi, ki: (b, qi, 0)),
                # K / V tiles (causally clamped).
                pl.BlockSpec((1, tk, E), kv_index),
                pl.BlockSpec((1, tk, E), kv_index),
                # Output projection weight and bias (resident).
                pl.BlockSpec((E, E), lambda b, qi, ki: (0, 0)),
                pl.BlockSpec((1, E), lambda b, qi, ki: (0, 0)),
            ],
            out_specs=pl.BlockSpec((1, tq, E), lambda b, qi, ki: (b, qi, 0)),
            scratch_shapes=[
                pltpu.VMEM((tq, E), jnp.float32),             # lane-dense acc
                pltpu.VMEM((heads, tq, 128), jnp.float32),    # running max (repl.)
                pltpu.VMEM((heads, tq, 128), jnp.float32),    # running sum (repl.)
            ]),
        compiler_params=pltpu.CompilerParams(
            dimension_semantics=("parallel", "parallel", "arbitrary"),
            vmem_limit_bytes=vmem_limit_bytes),
    )(q, k, v, w_o, bo_f32)
    return out


def self_attention_ref(x, wq_t, wk_t, wv_t, wo_t, bo, *, heads,
                       compute_dtype=jnp.bfloat16):
    """Pure-JAX reference matching the PyTorch forward (eval mode, no pad mask),
    with matmul operands cast to compute_dtype to mirror the kernel's MXU dtypes."""
    B, T, E = x.shape
    hd = E // heads
    cd = compute_dtype

    def mm(a, b):
        return jnp.matmul(a.astype(cd), b.astype(cd),
                          preferred_element_type=jnp.float32)

    q = mm(x, wq_t).reshape(B, T, heads, hd).transpose(0, 2, 1, 3)
    k = mm(x, wk_t).reshape(B, T, heads, hd).transpose(0, 2, 1, 3)
    v = mm(x, wv_t).reshape(B, T, heads, hd).transpose(0, 2, 1, 3)
    scores = jnp.einsum('bhid,bhjd->bhij', q.astype(cd), k.astype(cd),
                        preferred_element_type=jnp.float32) / (hd ** 0.5)
    causal = jnp.tril(jnp.ones((T, T), dtype=bool))
    scores = jnp.where(causal[None, None], scores, -jnp.inf)
    attn = jax.nn.softmax(scores, axis=-1)
    out = jnp.einsum('bhij,bhjd->bhid', attn.astype(cd), v.astype(cd),
                     preferred_element_type=jnp.float32)
    out = out.transpose(0, 2, 1, 3).reshape(B, T, E)
    out = mm(out, wo_t) + bo
    return out.astype(x.dtype)


if __name__ == "__main__":
    B, T, E, HEADS = 2, 8, 32, 4

    key = jax.random.PRNGKey(0)
    kx, kq, kk, kv, ko, kb = jax.random.split(key, 6)

    x = jax.random.normal(kx, (B, T, E), dtype=jnp.float32)
    # Weights stored as (in, out) == torch Linear weight transposed.
    wq_t = jax.random.normal(kq, (E, E), dtype=jnp.float32) * 0.1
    wk_t = jax.random.normal(kk, (E, E), dtype=jnp.float32) * 0.1
    wv_t = jax.random.normal(kv, (E, E), dtype=jnp.float32) * 0.1
    wo_t = jax.random.normal(ko, (E, E), dtype=jnp.float32) * 0.1
    bo = jax.random.normal(kb, (1, E), dtype=jnp.float32) * 0.1

    out = self_attention_pallas(x, wq_t, wk_t, wv_t, wo_t, bo, heads=HEADS)
    out = jax.block_until_ready(out)

    ref = self_attention_ref(x, wq_t, wk_t, wv_t, wo_t, bo, heads=HEADS)
    assert out.shape == (B, T, E)
    assert jnp.allclose(out, ref, atol=2e-2, rtol=2e-2), "mismatch vs reference"

    print("KERNEL_OK")
</pallas_src>

<mosaic_0001>
module attributes {stable_mosaic.version = 11 : i64} {
  func.func @_qkv_proj_kernel(%arg0: i32, %arg1: i32, %arg2: memref<1x8x32xbf16, #tpu.memory_space<vmem>>, %arg3: memref<32x96xbf16, #tpu.memory_space<vmem>>, %arg4: memref<1x8x32xbf16, #tpu.memory_space<vmem>>, %arg5: memref<1x8x32xbf16, #tpu.memory_space<vmem>>, %arg6: memref<1x8x32xbf16, #tpu.memory_space<vmem>>) attributes {dimension_semantics = [#tpu.dimension_semantics<parallel>, #tpu.dimension_semantics<parallel>], iteration_bounds = array<i64: 2, 1>, scalar_prefetch = 0 : i64, scratch_operands = 0 : i64, tpu.core_type = #tpu.core_type<tc>, window_params = [{transform_indices = @transform_0, window_bounds = array<i64: 1, 8, 32>}, {pipeline_mode = #tpu.pipeline_mode<synchronous>, transform_indices = @transform_1, window_bounds = array<i64: 32, 96>}, {transform_indices = @transform_2, window_bounds = array<i64: 1, 8, 32>}, {transform_indices = @transform_3, window_bounds = array<i64: 1, 8, 32>}, {transform_indices = @transform_4, window_bounds = array<i64: 1, 8, 32>}]} {
    %c0 = arith.constant 0 : index
    %c0_0 = arith.constant 0 : index
    %c0_1 = arith.constant 0 : index
    %0 = vector.load %arg2[%c0, %c0_0, %c0_1] : memref<1x8x32xbf16, #tpu.memory_space<vmem>>, vector<1x8x32xbf16>
    %1 = vector.shape_cast %0 : vector<1x8x32xbf16> to vector<8x32xbf16>
    %c0_2 = arith.constant 0 : index
    %c0_3 = arith.constant 0 : index
    %2 = vector.load %arg3[%c0_2, %c0_3] : memref<32x96xbf16, #tpu.memory_space<vmem>>, vector<32x32xbf16>
    %cst = arith.constant dense<0.000000e+00> : vector<8x32xf32>
    %3 = tpu.matmul %1, %2, %cst {dimension_numbers = #tpu.dot_dimension_numbers<[1], [0], [0], [1], [0, 0, 1, 1], [], []>} : vector<8x32xbf16>, vector<32x32xbf16>, vector<8x32xf32> -> vector<8x32xf32>
    %4 = arith.truncf %3 : vector<8x32xf32> to vector<8x32xbf16>
    %c0_4 = arith.constant 0 : index
    %c0_5 = arith.constant 0 : index
    %c0_6 = arith.constant 0 : index
    %5 = vector.load %arg4[%c0_4, %c0_5, %c0_6] : memref<1x8x32xbf16, #tpu.memory_space<vmem>>, vector<1x8x32xbf16>
    %6 = vector.shape_cast %5 : vector<1x8x32xbf16> to vector<8x32xbf16>
    %7 = vector.shape_cast %4 : vector<8x32xbf16> to vector<1x8x32xbf16>
    tpu.vector_store %arg4[%c0_4, %c0_5, %c0_6], %7 {strides = array<i32>} : memref<1x8x32xbf16, #tpu.memory_space<vmem>>, vector<1x8x32xbf16>,
    %c0_7 = arith.constant 0 : index
    %c32 = arith.constant 32 : index
    %8 = vector.load %arg3[%c0_7, %c32] : memref<32x96xbf16, #tpu.memory_space<vmem>>, vector<32x32xbf16>
    %cst_8 = arith.constant dense<0.000000e+00> : vector<8x32xf32>
    %9 = tpu.matmul %1, %8, %cst_8 {dimension_numbers = #tpu.dot_dimension_numbers<[1], [0], [0], [1], [0, 0, 1, 1], [], []>} : vector<8x32xbf16>, vector<32x32xbf16>, vector<8x32xf32> -> vector<8x32xf32>
    %10 = arith.truncf %9 : vector<8x32xf32> to vector<8x32xbf16>
    %c0_9 = arith.constant 0 : index
    %c0_10 = arith.constant 0 : index
    %c0_11 = arith.constant 0 : index
    %11 = vector.load %arg5[%c0_9, %c0_10, %c0_11] : memref<1x8x32xbf16, #tpu.memory_space<vmem>>, vector<1x8x32xbf16>
    %12 = vector.shape_cast %11 : vector<1x8x32xbf16> to vector<8x32xbf16>
    %13 = vector.shape_cast %10 : vector<8x32xbf16> to vector<1x8x32xbf16>
    tpu.vector_store %arg5[%c0_9, %c0_10, %c0_11], %13 {strides = array<i32>} : memref<1x8x32xbf16, #tpu.memory_space<vmem>>, vector<1x8x32xbf16>,
    %c0_12 = arith.constant 0 : index
    %c64 = arith.constant 64 : index
    %14 = vector.load %arg3[%c0_12, %c64] : memref<32x96xbf16, #tpu.memory_space<vmem>>, vector<32x32xbf16>
    %cst_13 = arith.constant dense<0.000000e+00> : vector<8x32xf32>
    %15 = tpu.matmul %1, %14, %cst_13 {dimension_numbers = #tpu.dot_dimension_numbers<[1], [0], [0], [1], [0, 0, 1, 1], [], []>} : vector<8x32xbf16>, vector<32x32xbf16>, vector<8x32xf32> -> vector<8x32xf32>
    %16 = arith.truncf %15 : vector<8x32xf32> to vector<8x32xbf16>
    %c0_14 = arith.constant 0 : index
    %c0_15 = arith.constant 0 : index
    %c0_16 = arith.constant 0 : index
    %17 = vector.load %arg6[%c0_14, %c0_15, %c0_16] : memref<1x8x32xbf16, #tpu.memory_space<vmem>>, vector<1x8x32xbf16>
    %18 = vector.shape_cast %17 : vector<1x8x32xbf16> to vector<8x32xbf16>
    %19 = vector.shape_cast %16 : vector<8x32xbf16> to vector<1x8x32xbf16>
    tpu.vector_store %arg6[%c0_14, %c0_15, %c0_16], %19 {strides = array<i32>} : memref<1x8x32xbf16, #tpu.memory_space<vmem>>, vector<1x8x32xbf16>,
    return
  }
  func.func @transform_0(%arg0: i32, %arg1: i32) -> (i32, i32, i32) {
    %c0_i32 = arith.constant 0 : i32
    %c0_i32_0 = arith.constant 0 : i32
    return %arg0, %arg1, %c0_i32 : i32, i32, i32
  }
  func.func @transform_1(%arg0: i32, %arg1: i32) -> (i32, i32) {
    %c0_i32 = arith.constant 0 : i32
    %c0_i32_0 = arith.constant 0 : i32
    %c0_i32_1 = arith.constant 0 : i32
    return %c0_i32, %c0_i32_0 : i32, i32
  }
  func.func @transform_2(%arg0: i32, %arg1: i32) -> (i32, i32, i32) {
    %c0_i32 = arith.constant 0 : i32
    %c0_i32_0 = arith.constant 0 : i32
    return %arg0, %arg1, %c0_i32 : i32, i32, i32
  }
  func.func @transform_3(%arg0: i32, %arg1: i32) -> (i32, i32, i32) {
    %c0_i32 = arith.constant 0 : i32
    %c0_i32_0 = arith.constant 0 : i32
    return %arg0, %arg1, %c0_i32 : i32, i32, i32
  }
  func.func @transform_4(%arg0: i32, %arg1: i32) -> (i32, i32, i32) {
    %c0_i32 = arith.constant 0 : i32
    %c0_i32_0 = arith.constant 0 : i32
    return %arg0, %arg1, %c0_i32 : i32, i32, i32
  }
}

</mosaic_0001>

<bundles_post_ra>
// kernel: tpu_custom_call.1
= control target key start
LH: loop header
LB: loop body
LE: loop exit
PB: predicated region body
PF: predicated region fallthrough
CT: control target
= control target key end

     0   :  { %10 = vsyncpa [#allocation3], 0  ;;  %s1168_s0 = inlined_call_operand.hbm [shape: bf16[2,8,32], index: 0, kind: input, shape index: {}]   ;;  %s1169_s1 = inlined_call_operand.hbm [shape: bf16[32,96], index: 1, kind: input, shape index: {}]   ;;  %s1170_s2 = inlined_call_operand.hbm [shape: bf16[2,8,32], index: 2, kind: output, shape index: {0}]   ;;  %s1171_s3 = inlined_call_operand.hbm [shape: bf16[2,8,32], index: 3, kind: output, shape index: {1}]   ;;  %s1172_s4 = inlined_call_operand.hbm [shape: bf16[2,8,32], index: 4, kind: output, shape index: {2}]  }
   0x1   :  { %12 = vsyncpa [#allocation3 + $0x1], 0 }
   0x2   :  { %13 = vsyncpa [#allocation6], 0 }
   0x3   :  { %14 = vsyncpa [#allocation4], 0 }
   0x4   :  { %16 = vsyncpa [#allocation4 + $0x1], 0 }
   0x5   :  { %17 = vsyncpa [#allocation9], 0 }
   0x6   :  { %19 = vsyncpa [#allocation9 + $0x1], 0  ;;  %s970_s15 = smov 0   ;;  %s972_s16 = smov 0  }
   0x7   :  { %s974_s17 = smov 0   ;;  %s976_s18 = smov 0  }
   0x8   :  { %s978_s19 = smov 0   ;;  %s980_s20 = smov 0  }
   0x9 LB: > { %s1001_s21 = sadd.s32 4294967295, %s938_s20   ;;  %p593_p0 = scmp.ge.s32.totalorder %s938_s20, 1  ;;  %s938_s20 = sphi %s980_s20, %s25_s20   ;;  %s934_s19 = sphi %s978_s19, %s1182_s19   ;;  %s930_s18 = sphi %s976_s18, %s1181_s18   ;;  %s926_s17 = sphi %s974_s17, %s1180_s17   ;;  %s922_s16 = sphi %s972_s16, %s1179_s16   ;;  %s918_s15 = sphi %s970_s15, %s1178_s15  }
   0xa   : > { %p60_p1 = scmp.eq.s32.totalorder %s1001_s21, 0  ;;  %p175_p2 = scmp.lt.s32.totalorder %s938_s20, 3 }
   0xb   : > { %s186_s24 = sshll.u32 %s1169_s1, 4  ;;  %s940_s26 = smov [#allocation5]   ;;  %s187_s24 = int_to_ptr.hbm [resolvable:$true] %s186_s24 }
   0xc   : > { %p1009_p3 = pnand %p593_p0, %p175_p2  ;;  %s188_s27 = sshll.u32 %s940_s26, 4  ;;  %s189_s27 = int_to_ptr.vmem [resolvable:$true] %s188_s27 }
   0xd   : > { %p595_p6 = scmp.ge.s32.totalorder %s938_s20, 2  ;;  %s941_s28 = smov 64  }
   0xe   : > { %p657_p4 = pneg %p1009_p3  ;;  %s942_s29 = smov 4  }
   0xf   : > { %s592_s30 = sadd.s32 4294967294, %s938_s20   ;;  %s37_s5 = sadd.s32 1, %s934_s19 }
  0x10   : > { %p658_p5 = pnand %p657_p4, %p60_p1  ;;  %s46_s6 = sadd.s32 1, %s926_s17 }
  0x11   : > { %p39_p7 = scmp.ge.s32.totalorder %s37_s5, 2  ;;  %p53_p8 = scmp.ne.s32.totalorder %s926_s17, %s922_s16 }
  0x12   : > { %660 = dma.hbm_to_vmem [thread:$0]  (!%p658_p5), %s187_s24, 256, %s189_s27, [#allocation6], %s941_s28, %s941_s28, %s942_s29  }
  0x13   : > { %p54_p9 = scmp.eq.s32.totalorder %s938_s20, 0  ;;  %p59_p10 = scmp.ne.s32.totalorder %s922_s16, %s918_s15 }
  0x14   : > { %s1184_s5 = smov (%p39_p7, %s37_s5), 0  ;;  %p106_p13 = scmp.eq.s32.totalorder %s1001_s21, 1 }
  0x15   : > { %p1028_p11 = por %p54_p9, %p53_p8  ;;  %p1034_p12 = por %p60_p1, %p59_p10 }
  0x16   : > { %s41_s9 = ssub.s32 %s934_s19, %s1184_s5  ;;  %p112_p2 = scmp.eq.s32.totalorder %s592_s30, 1 }
  0x17   : > { %p44_p0 = scmp.eq.s32.totalorder %s41_s9, 0  ;;  %p1043_p4 = por %p106_p13, %p53_p8 }
  0x18   : > { %p676_p5 = scmp.lt.s32.totalorder %s938_s20, 2  ;;  %p1051_p7 = por %p112_p2, %p59_p10 }
  0x19   : > { %s1049_s11 = scalar_select %p44_p0, %s926_s17, %s46_s6  }
  0x1a   : > { %s202_s13 = sand.u32 1, %s926_s17   ;;  %s597_s22 = sshll.u32 %s934_s19, 2 }
  0x1b   : > { %s596_s14 = sshll.u32 %s202_s13, 2  ;;  %s211_s26 = scalar_lea.hbm %s1168_s0, %s597_s22 }
  0x1c   : > { %s206_s27 = scalar_lea.vmem [#allocation2], %s596_s14  ;;  %s213_s29 = sshll.u32 %s211_s26, 4  ;;  %s214_s29 = int_to_ptr.hbm [resolvable:$true] %s213_s29 }
  0x1d   : > { %s215_s28 = sshll.u32 %s206_s27, 4  ;;  %p662_p8 = pnand %p676_p5, %p1028_p11  ;;  %s216_s28 = int_to_ptr.vmem [resolvable:$true] %s215_s28 }
  0x1e   : > { %s203_s6 = scalar_lea.sflag [#allocation3], %s202_s13  ;;  %224 = sbr.rel (%p1009_p3) target bundleno = 309 (0x135), region = 28 }
  0x1f   : > { %664 = dma.hbm_to_vmem [thread:$0]  (!%p662_p8), %s214_s29, 64, %s216_s28, %s203_s6  }
  0x20   : > { %s1065_s9 = sand.u32 (!%p1009_p3), 1, %s922_s16  }
  0x21   : > { %s1068_s23 = sshll.u32 (!%p1009_p3), %s1065_s9, 2  ;;  %s227_s14 = scalar_lea.sflag (!%p1009_p3), [#allocation3], %s1065_s9 }
  0x22   : > { %s230_s22 = scalar_lea.vmem (!%p1009_p3), [#allocation2], %s1068_s23 }
  0x23   : > { %901 = dma.done.wait (%p1034_p12), %s227_s14, 64  }
  0x24   : > { %903 = vsyncadd (%p1034_p12), %s227_s14, 4294967232 }
  0x25   : > { %905 = dma.done.wait (%p60_p1), [#allocation6], 256  }
  0x26   : > { %907 = vsyncadd (%p60_p1), [#allocation6], 4294967040  ;;  %v644_v0 = vld [vmem:[#allocation5 + $0x8] sm:$0xff]  ;;  %s943_s25 = smov 64   ;;  %s944_s7 = smov 96   ;;  %v643_v2 = vld [vmem:[#allocation5] sm:$0xff] }
  0x27   : > { %v642_v1 = vld [vmem:[#allocation5 + $0x8] sm:$0xff]  ;;  %360 = vrot.lane.b32.xlu0 %v644_v0, %s943_s25  ;;  %v641_v3 = vld [vmem:[#allocation5] sm:$0xff]  ;;  %v272_v6 = vld [vmem:[%s230_s22] sm:$0xf]  ;;  %vm289_vm0 = vcmask 261120   ;;  %s1081_s8 = sshll.u32 %s930_s18, 2 }
  0x28   : > { %325 = vrot.lane.b32.xlu1 %v642_v1, %s944_s7  ;;  %v640_v4 = vld [vmem:[#allocation5 + $0x8] sm:$0xff]  ;;  %v639_v5 = vld [vmem:[#allocation5] sm:$0xff]  ;;  %s401_s26 = scalar_lea.hbm %s1170_s2, %s1081_s8  ;;  %s256_s27 = scalar_lea.vmem [#allocation7], %s1068_s23  ;;  %vm307_vm1 = vcmask 257024  }
  0x29   : > { %299 = vmatpush.bf16.msra.mxu0 %v640_v4  ;;  %s403_s28 = sshll.u32 %s256_s27, 4  ;;  %s405_s29 = sshll.u32 %s401_s26, 4  ;;  %s404_s28 = int_to_ptr.vmem [resolvable:$true] %s403_s28  ;;  %s406_s29 = int_to_ptr.hbm [resolvable:$true] %s405_s29 }
  0x2a   : > { %s380_s6 = scalar_lea.sflag [#allocation4], %s1065_s9  ;;  %s806_s14 = sshra.s32 %s406_s29, 4  ;;  %s807_s14 = int_to_ptr.hbm [resolvable:$true] %s806_s14 }
  0x2b   : > { %s808_s18 = scalar_lea.hbm %s807_s14, 4  ;;  %p813_p10 = scmp.lt.s32.totalorder %s807_s14, %s1170_s2 }
  0x2c   : > { %p809_p1 = scmp.ne.s32.totalorder %s807_s14, %s808_s18 }
  0x2d   : > { %300 = vmatpush.bf16.msra.mxu0 %v639_v5 }
  0x2e   : > { %p810_p3 = pnand %p809_p1, %p1043_p4 }
  0x2f   : > { %358 = vrot.lane.b32.xlu0 %v643_v2, %s943_s25 }
  0x30   : > { %323 = vrot.lane.b32.xlu1 %v641_v3, %s944_s7  ;;  %612 = vmatmul.msk.bf16.vlgmr.msra.gmra.mxu0 %vm289_vm0, %v272_v6  ;;  %p811_p9 = pneg %p810_p3  ;;  %s812_s7 = scalar_lea.hbm %s1170_s2, 8 }
  0x31   : > { %p814_p11 = scmp.lt.s32.totalorder %s812_s7, %s808_s18 }
  0x33   : > { %p815_p12 = por %p814_p11, %p813_p10 }
  0x35   : > { %p816_p13 = pnand %p815_p12, %p811_p9 }
  0x99   : > { %v361_v7 = vpop.permute.xlu0 %360 }
  0x9a   : > { %v326_v8 = vpop.permute.xlu1 %325  ;;  %370 = vmatpush.bf16.msra.mxu2 %v361_v7 }
  0x9b   : > { %335 = vmatpush.bf16.msra.mxu1 %v326_v8 }
  0xa1   : > { %v359_v9 = vpop.permute.xlu0 %358 }
  0xa2   : > { %v324_v10 = vpop.permute.xlu1 %323  ;;  %371 = vmatpush.bf16.msra.mxu2 %v359_v9 }
  0xa3   : > { %336 = vmatpush.bf16.msra.mxu1 %v324_v10 }
  0xa5   : > { %630 = vmatmul.msk.bf16.vlgmr.msra.gmra.mxu2 %vm289_vm0, %v272_v6 }
  0xa6   : > { %621 = vmatmul.msk.bf16.vlgmr.msra.gmra.mxu1 %vm289_vm0, %v272_v6 }
  0xad   : > { %v302_v11 = vpop.f32.mrf.mxu0 }
  0xae   : > { %v306_v12 = vpack.c.bf16 %v302_v11, %v302_v11 }
  0xb0   : > { %308 = vst.msk [vmem:[%s256_s27] sm:$0xf] %vm307_vm1, %v306_v12 }
  0xb5   : > { %v304_v13 = vpop.f32.mrf.mxu0 }
  0xb6   : > { %819 = shalt.err (!%p816_p13)
}
  0xb7   : > { %651 = dma.vmem_to_hbm [thread:$0]  (%p1043_p4), %s404_s28, 64, %s406_s29, %s380_s6  }
  0xb8   : > { %s416_s27 = scalar_lea.hbm %s1171_s3, %s1081_s8  ;;  %s384_s22 = sand.u32 1, %s1001_s21  }
  0xb9   : > { %s263_s25 = scalar_lea.vmem [#allocation8], %s1068_s23  ;;  %s420_s14 = sshll.u32 %s416_s27, 4  ;;  %s421_s14 = int_to_ptr.hbm [resolvable:$true] %s420_s14 }
  0xba   : > { %s418_s13 = sshll.u32 %s263_s25, 4  ;;  %s431_s24 = scalar_lea.hbm %s1172_s4, %s1081_s8  ;;  %s419_s13 = int_to_ptr.vmem [resolvable:$true] %s418_s13 }
  0xbb   : > { %s270_s28 = scalar_lea.vmem [#allocation10], %s1068_s23  ;;  %s1114_s6 = sshll.u32 %s431_s24, 4  ;;  %s436_s6 = int_to_ptr.hbm [resolvable:$true] %s1114_s6 }
  0xbc   : > { %s1112_s29 = sshll.u32 %s270_s28, 4  ;;  %s1116_s21 = scalar_lea.sflag [#allocation9], %s384_s22  ;;  %s434_s29 = int_to_ptr.vmem [resolvable:$true] %s1112_s29 }
  0xbd   : > { %s834_s9 = sshra.s32 %s421_s14, 4  ;;  %s840_s18 = scalar_lea.hbm %s1171_s3, 8  ;;  %s835_s9 = int_to_ptr.hbm [resolvable:$true] %s834_s9 }
  0xbe   : > { %s836_s26 = scalar_lea.hbm %s835_s9, 4  ;;  %p841_p8 = scmp.lt.s32.totalorder %s835_s9, %s1171_s3 }
  0xbf   : > { %p837_p0 = scmp.ne.s32.totalorder %s835_s9, %s836_s26  ;;  %p842_p1 = scmp.lt.s32.totalorder %s840_s18, %s836_s26 }
  0xc1   : > { %p838_p2 = pnand %p837_p0, %p1043_p4  ;;  %p843_p3 = por %p842_p1, %p841_p8 }
  0xc3   : > { %p839_p5 = pneg %p838_p2 }
  0xc5   : > { %p844_p9 = pnand %p843_p3, %p839_p5 }
 0x123   : > { %v338_v14 = vpop.f32.mrf.mxu1 }
 0x124   : > { %v342_v15 = vpack.c.bf16 %v338_v14, %v338_v14 }
 0x126   : > { %343 = vst.msk [vmem:[%s263_s25] sm:$0xf] %vm307_vm1, %v342_v15 }
 0x127   : > { %847 = shalt.err (!%p844_p9)
}
 0x128   : > { %652 = dma.vmem_to_hbm [thread:$0]  (%p1043_p4), %s419_s13, 64, %s421_s14, %s1116_s21   ;;  %v373_v16 = vpop.f32.mrf.mxu2 }
 0x129   : > { %v377_v17 = vpack.c.bf16 %v373_v16, %v373_v16  ;;  %s862_s23 = sshra.s32 %s436_s6, 4  ;;  %s868_s26 = scalar_lea.hbm %s1172_s4, 8  ;;  %s863_s23 = int_to_ptr.hbm [resolvable:$true] %s862_s23 }
 0x12a   : > { %s864_s22 = scalar_lea.hbm %s863_s23, 4  ;;  %p869_p13 = scmp.lt.s32.totalorder %s863_s23, %s1172_s4 }
 0x12b   : > { %v340_v18 = vpop.f32.mrf.mxu1  ;;  %378 = vst.msk [vmem:[%s270_s28] sm:$0xf] %vm307_vm1, %v377_v17  ;;  %p865_p10 = scmp.ne.s32.totalorder %s863_s23, %s864_s22  ;;  %p870_p0 = scmp.lt.s32.totalorder %s868_s26, %s864_s22 }
 0x12d   : > { %p866_p11 = pnand %p865_p10, %p1043_p4  ;;  %p871_p2 = por %p870_p0, %p869_p13 }
 0x12f   : > { %p867_p12 = pneg %p866_p11 }
 0x131   : > { %p872_p5 = pnand %p871_p2, %p867_p12 }
 0x133   : > { %875 = shalt.err (!%p872_p5)
}
 0x134   : > { %653 = dma.vmem_to_hbm [thread:$0]  (%p1043_p4), %s434_s29, 64, %s436_s6, %s1116_s21   ;;  %v375_v19 = vpop.f32.mrf.mxu2 }
 0x135 PF: > { %s447_s14 = sand.u32 1, %s918_s15   ;;  %p666_p8 = pnand %p595_p6, %p1051_p7 }
 0x136   : > { %s448_s28 = scalar_lea.sflag [#allocation4], %s447_s14 }
 0x137   : > { %p667_p1 = pneg %p666_p8 }
 0x139   : > { %909 = dma.done.wait (%p667_p1), %s448_s28, 64  }
 0x13a   : > { %911 = vsyncadd (%p667_p1), %s448_s28, 4294967232  ;;  %s457_s27 = sand.u32 1, %s592_s30  }
 0x13b   : > { %s458_s18 = scalar_lea.sflag [#allocation9], %s457_s27 }
 0x13c   : > { %913 = dma.done.wait (%p667_p1), %s458_s18, 128  }
 0x13d   : > { %915 = vsyncadd (%p667_p1), %s458_s18, 4294967168  ;;  %s25_s20 = sadd.s32 1, %s938_s20   ;;  %s1178_s15 = smov %s922_s16 }
 0x13e   : > { %p22_p4 = scmp.ge.s32.totalorder %s25_s20, 4   ;;  %s1179_s16 = smov %s926_s17 }
 0x13f   : > { %s1180_s17 = smov %s1049_s11  ;;  %s1181_s18 = smov %s934_s19 }
 0x140   : > { %s1182_s19 = smov %s1184_s5  ;;  %24 = sbr.rel (!%p22_p4) target bundleno = 9 (0x9), region = 109 }
 0x145   :  { %474 = vsyncpa [#allocation3], 1 }
 0x146   :  { %476 = vsyncpa [#allocation3 + $0x1], 1 }
 0x147   :  { %477 = vsyncpa [#allocation6], 1 }
 0x148   :  { %478 = vsyncpa [#allocation4], 1 }
 0x149   :  { %480 = vsyncpa [#allocation4 + $0x1], 1 }
 0x14a   :  { %481 = vsyncpa [#allocation9], 1 }
 0x14b   :  { %483 = vsyncpa [#allocation9 + $0x1], 1 }

</bundles_post_ra>
